<compile_context>
chip_gen: v7x
topology: tpu7x:2x2x1
jax: 0.10.0
libtpu: 0.0.40
codegen_flags: <defaults>
</compile_context>

<pallas_src>
import functools

import jax
import jax.numpy as jnp
import numpy as np
from jax import lax
from jax.experimental import pallas as pl
from jax.experimental.pallas import tpu as pltpu

_F32 = jnp.float32
# "A @ B.T" without materializing B.T: contract the LAST dim of both operands.
_DN_T = (((1,), (1,)), ((), ()))

_STRIP_BYTES = 4 << 20   # keep K-resident current strips <= 4 MiB per operand


# ----------------------------------------------------------------------------
# padding / tiling helpers
# ----------------------------------------------------------------------------
def _pad_sub(n):
    return max(8, ((n + 7) // 8) * 8)


def _pad_dim(n):
    """Lane padding of a feature dim in the augmented (homogeneous) form.

    Always leaves at least one free column (index n) for the intercept, and
    bumps large odd multiples of 128 up to a multiple of 256 (<=15% extra
    padding) so 256/512-wide tile picks stay available."""
    p = ((n + 1 + 127) // 128) * 128
    if p % 256 != 0 and p >= 896:
        p += 128
    return p


def _row_pad(m):
    """Sublane padding of the running slope's row count.  Small heads stay one
    8-aligned tile (the big review win); large ones pad/tile at 256."""
    m8 = _pad_sub(m)
    return m8 if m8 <= 512 else ((m + 255) // 256) * 256


def _row_tile(mr):
    return mr if mr <= 512 else 256


def _tile(dim):
    """Largest of {512, 256, 128} dividing the (already padded) lane dim."""
    for t in (512, 256, 128):
        if dim % t == 0:
            return t
    return dim


def _mosaic_params(dims_sem, data_bytes):
    # Double-buffered blocks + scratch + headroom, capped so the same value is
    # legal on v5e/v6e (128 MiB VMEM) and v7x (64 MiB per TensorCore).
    limit = int(min(max(data_bytes + (8 << 20), 16 << 20), 48 << 20))
    return pltpu.CompilerParams(dimension_semantics=dims_sem,
                                vmem_limit_bytes=limit)


# ----------------------------------------------------------------------------
# augmented (homogeneous-coordinate) operand builders
# ----------------------------------------------------------------------------
def _aug_current(slope, intercept, m_rows, ka):
    """[m_rows, ka]: slope at [0:M, 0:K], intercept (one per output row) at
    column K, zeros elsewhere."""
    s = jnp.asarray(slope, _F32)
    b = jnp.asarray(intercept, _F32).reshape(-1)
    m, k = s.shape
    out = jnp.zeros((m_rows, ka), _F32)
    out = out.at[:m, :k].set(s)
    out = out.at[:m, k].set(b)
    return out


def _aug_prev(slope, intercept, ka_rows, na):
    """[ka_rows, na]: slope at [0:K, 0:N], intercept at [0:K, N], and a unit at
    [K, N] so the current matrix's intercept column passes straight through."""
    s = jnp.asarray(slope, _F32)
    b = jnp.asarray(intercept, _F32).reshape(-1)
    k, n = s.shape
    out = jnp.zeros((ka_rows, na), _F32)
    out = out.at[:k, :n].set(s)
    out = out.at[:k, n].set(b)
    out = out.at[k, n].set(1.0)
    return out


def _aug_box(lb0, ub0, bs, ka):
    """Stack the input box into one [2*bs, ka] LHS: rows 0..B-1 = lb0, rows
    bs..bs+B-1 = ub0, with the homogeneous '1' at column d0."""
    lb0 = jnp.asarray(lb0, _F32)
    ub0 = jnp.asarray(ub0, _F32)
    b, d0 = lb0.shape
    x = jnp.zeros((2 * bs, ka), _F32)
    x = x.at[:b, :d0].set(lb0)
    x = x.at[:b, d0].set(1.0)
    x = x.at[bs:bs + b, :d0].set(ub0)
    x = x.at[bs:bs + b, d0].set(1.0)
    return x


def _ktiled(a, nk, tk):
    """Pre-tile a K-resident operand to [nk, rows, tk]; the kernel selects the
    k-tile with a leading-axis index (no dynamic lane slicing)."""
    rows = a.shape[0]
    return a.reshape(rows, nk, tk).swapaxes(0, 1)


# ----------------------------------------------------------------------------
# Pallas kernels
# ----------------------------------------------------------------------------
def _compose_dedup_kernel(strip, a_ref, p_ref, o_ref, acc):
    """lslope is uslope on both sides (the DeepPolyLinearLayer chain): pos/neg
    splits cancel and one compose step is a single augmented matmul."""
    k = pl.program_id(2)

    @pl.when(k == 0)
    def _():
        acc[...] = jnp.zeros_like(acc)

    a = a_ref[k] if strip else a_ref[0]
    acc[...] += jnp.dot(a, p_ref[...], preferred_element_type=_F32)

    @pl.when(k == pl.num_programs(2) - 1)
    def _():
        o_ref[...] = acc[...]


def _compose_general_kernel(strip, al_ref, au_ref, pls_ref, pus_ref,
                            ol_ref, ou_ref, acc_l, acc_u):
    """General compose (distinct lower / upper transformers):
         new_ls = pos(cls) @ pls + neg(cls) @ pus
         new_us = pos(cus) @ pus + neg(cus) @ pls
    (intercepts ride along in the augmented column)."""
    k = pl.program_id(2)

    @pl.when(k == 0)
    def _():
        acc_l[...] = jnp.zeros_like(acc_l)
        acc_u[...] = jnp.zeros_like(acc_u)

    al = al_ref[k] if strip else al_ref[0]
    au = au_ref[k] if strip else au_ref[0]
    p_lo = pls_ref[...]
    p_up = pus_ref[...]
    # one statement per dot: each MXU pop fuses with exactly one accumulate
    acc_l[...] += jnp.dot(jnp.maximum(al, 0.0), p_lo, preferred_element_type=_F32)
    acc_l[...] += jnp.dot(jnp.minimum(al, 0.0), p_up, preferred_element_type=_F32)
    acc_u[...] += jnp.dot(jnp.maximum(au, 0.0), p_up, preferred_element_type=_F32)
    acc_u[...] += jnp.dot(jnp.minimum(au, 0.0), p_lo, preferred_element_type=_F32)

    @pl.when(k == pl.num_programs(2) - 1)
    def _():
        ol_ref[...] = acc_l[...]
        ou_ref[...] = acc_u[...]


def _certify_dedup_kernel(bs, x_ref, a_ref, out_ref, acc_p, acc_n):
    """Concretize with ls is us: the stacked box X = [lb0; ub0] streams through
    each pos/neg slope tile once (one MXU weight load per tile per sign)."""
    k = pl.program_id(1)

    @pl.when(k == 0)
    def _():
        acc_p[...] = jnp.zeros_like(acc_p)
        acc_n[...] = jnp.zeros_like(acc_n)

    a = a_ref[...]
    x = x_ref[k]
    acc_p[...] += lax.dot_general(x, jnp.maximum(a, 0.0), _DN_T,
                                  preferred_element_type=_F32)
    acc_n[...] += lax.dot_general(x, jnp.minimum(a, 0.0), _DN_T,
                                  preferred_element_type=_F32)

    @pl.when(k == pl.num_programs(1) - 1)
    def _():
        out_ref[:bs, :] = acc_p[:bs, :] + acc_n[bs:, :]     # lower bounds
        out_ref[bs:, :] = acc_p[bs:, :] + acc_n[:bs, :]     # upper bounds


def _certify_general_kernel(bs, x_ref, al_ref, au_ref, out_ref, acc_lb, acc_ub):
    """Concretize with distinct lower / upper slopes:
         lb = lb0 @ pos(ls).T + ub0 @ neg(ls).T   (+ intercept via aug column)
         ub = ub0 @ pos(us).T + lb0 @ neg(us).T"""
    k = pl.program_id(1)

    @pl.when(k == 0)
    def _():
        acc_lb[...] = jnp.zeros_like(acc_lb)
        acc_ub[...] = jnp.zeros_like(acc_ub)

    x = x_ref[k]
    x_lo = x[:bs, :]
    x_up = x[bs:, :]
    al = al_ref[...]
    au = au_ref[...]
    acc_lb[...] += lax.dot_general(x_lo, jnp.maximum(al, 0.0), _DN_T,
                                   preferred_element_type=_F32)
    acc_lb[...] += lax.dot_general(x_up, jnp.minimum(al, 0.0), _DN_T,
                                   preferred_element_type=_F32)
    acc_ub[...] += lax.dot_general(x_up, jnp.maximum(au, 0.0), _DN_T,
                                   preferred_element_type=_F32)
    acc_ub[...] += lax.dot_general(x_lo, jnp.minimum(au, 0.0), _DN_T,
                                   preferred_element_type=_F32)

    @pl.when(k == pl.num_programs(1) - 1)
    def _():
        out_ref[:bs, :] = acc_lb[...]
        out_ref[bs:, :] = acc_ub[...]


# ----------------------------------------------------------------------------
# pallas_call wrappers
# ----------------------------------------------------------------------------
def pallas_compose(a_lo, a_up, p_lo, p_up, dedup):
    """One backsubstitution step on augmented matrices.
    a_*: [M_rows, KA] (current), p_*: [KA, NA] (previous)."""
    mr, ka = a_lo.shape
    na = p_lo.shape[1]
    tm, tn, tk = _row_tile(mr), _tile(na), _tile(ka)
    nk = ka // tk
    n_cur = 1 if dedup else 2
    strip = n_cur * tm * ka * 4 <= _STRIP_BYTES

    if strip:
        a_spec = pl.BlockSpec((nk, tm, tk), lambda i, j, k: (0, i, 0))
    else:
        a_spec = pl.BlockSpec((1, tm, tk), lambda i, j, k: (k, i, 0))
    p_spec = pl.BlockSpec((tk, tn), lambda i, j, k: (k, j))
    o_spec = pl.BlockSpec((tm, tn), lambda i, j, k: (i, j))
    grid = (mr // tm, na // tn, nk)

    a_blk = (nk if strip else 1) * tm * tk
    data_bytes = 4 * n_cur * (2 * a_blk + 2 * tk * tn + 3 * tm * tn)
    params = _mosaic_params(("parallel", "parallel", "arbitrary"), data_bytes)

    if dedup:
        out = pl.pallas_call(
            functools.partial(_compose_dedup_kernel, strip),
            grid=grid,
            in_specs=[a_spec, p_spec],
            out_specs=o_spec,
            out_shape=jax.ShapeDtypeStruct((mr, na), _F32),
            scratch_shapes=[pltpu.VMEM((tm, tn), _F32)],
            compiler_params=params,
        )(_ktiled(a_lo, nk, tk), p_lo)
        return out, out

    new_lo, new_up = pl.pallas_call(
        functools.partial(_compose_general_kernel, strip),
        grid=grid,
        in_specs=[a_spec, a_spec, p_spec, p_spec],
        out_specs=(o_spec, o_spec),
        out_shape=(jax.ShapeDtypeStruct((mr, na), _F32),
                   jax.ShapeDtypeStruct((mr, na), _F32)),
        scratch_shapes=[pltpu.VMEM((tm, tn), _F32),
                        pltpu.VMEM((tm, tn), _F32)],
        compiler_params=params,
    )(_ktiled(a_lo, nk, tk), _ktiled(a_up, nk, tk), p_lo, p_up)
    return new_lo, new_up


def pallas_certify(x_box, a_lo, a_up, bs, dedup):
    """Concretize augmented slopes against the stacked box.
    x_box: [2*bs, KA], a_*: [M_rows, KA].  Returns stacked [2*bs, M_rows]
    (rows 0..bs-1 = lower bounds, rows bs.. = upper bounds)."""
    two_bs, ka = x_box.shape
    mr = a_lo.shape[0]
    tn, tk = _row_tile(mr), _tile(ka)
    nk = ka // tk
    grid = (mr // tn, nk)

    x_spec = pl.BlockSpec((nk, two_bs, tk), lambda j, k: (0, 0, 0))   # resident
    a_spec = pl.BlockSpec((tn, tk), lambda j, k: (j, k))
    o_spec = pl.BlockSpec((two_bs, tn), lambda j, k: (0, j))
    x3 = _ktiled(x_box, nk, tk)

    if dedup:
        kernel = functools.partial(_certify_dedup_kernel, bs)
        operands = (x3, a_lo)
        in_specs = [x_spec, a_spec]
        scratch = [pltpu.VMEM((two_bs, tn), _F32), pltpu.VMEM((two_bs, tn), _F32)]
        data_bytes = 4 * (2 * (x3.size + tn * tk + two_bs * tn) + 2 * two_bs * tn)
    else:
        kernel = functools.partial(_certify_general_kernel, bs)
        operands = (x3, a_lo, a_up)
        in_specs = [x_spec, a_spec, a_spec]
        scratch = [pltpu.VMEM((bs, tn), _F32), pltpu.VMEM((bs, tn), _F32)]
        data_bytes = 4 * (2 * (x3.size + 2 * tn * tk + two_bs * tn) + 2 * bs * tn)

    return pl.pallas_call(
        kernel,
        grid=grid,
        in_specs=in_specs,
        out_specs=o_spec,
        out_shape=jax.ShapeDtypeStruct((two_bs, mr), _F32),
        scratch_shapes=scratch,
        compiler_params=_mosaic_params(("parallel", "arbitrary"), data_bytes),
    )(*operands)


# ----------------------------------------------------------------------------
# DeepPoly classes (JAX port; compute goes through the Pallas kernels above)
# ----------------------------------------------------------------------------
class DeepPolyConstraints:

    def __init__(self, lbounds, ubounds):
        self.lbounds = lbounds
        self.ubounds = ubounds
        self.previous = None
        self.transformer = None

    @classmethod
    def constraints_from_eps(cls, inputs, eps, clipper):
        lo, hi = clipper
        return cls(jnp.clip(inputs - eps, lo, hi),
                   jnp.clip(inputs + eps, lo, hi))

    @classmethod
    def constraints_from_transformer(cls, previous, lslope, lintercept,
                                     uslope, uintercept):
        self = cls.__new__(cls)
        self.lbounds = None
        self.ubounds = None
        self.previous = previous
        self.transformer = (lslope, lintercept, uslope, uintercept)
        return self

    @classmethod
    def constraints_from_flatten(cls, previous, lbounds, ubounds):
        self = cls.__new__(cls)
        self.lbounds = lbounds
        self.ubounds = ubounds
        self.previous = previous
        self.transformer = 'flatten'
        return self

    # -- internal: concretize augmented slopes against an input box ----------
    def _concretize(self, a_lo, a_up, dedup, n_out, initial_bounds):
        lb0 = jnp.asarray(initial_bounds.lbounds, _F32)
        ub0 = jnp.asarray(initial_bounds.ubounds, _F32)
        batch = lb0.shape[0]
        bs = _pad_sub(batch)
        x_box = _aug_box(lb0, ub0, bs, a_lo.shape[1])
        out = pallas_certify(x_box, a_lo, a_up, bs, dedup)
        self.lbounds = out[:batch, :n_out]
        self.ubounds = out[bs:bs + batch, :n_out]

    def certifier(self, lslope, lintercept, uslope, uintercept, initial_bounds):
        dedup = (lslope is uslope) and (lintercept is uintercept)
        m, k = jnp.asarray(lslope).shape
        mr, ka = _row_pad(m), _pad_dim(k)
        a_lo = _aug_current(lslope, lintercept, mr, ka)
        a_up = a_lo if dedup else _aug_current(uslope, uintercept, mr, ka)
        self._concretize(a_lo, a_up, dedup, m, initial_bounds)

    def backsubstitution(self):
        if self.lbounds is not None and self.ubounds is not None:
            return
        cls_, cli, cus_, cui = self.transformer
        dedup = (cls_ is cus_) and (cli is cui)
        m, k_true = jnp.asarray(cls_).shape
        mr, ka = _row_pad(m), _pad_dim(k_true)
        a_lo = _aug_current(cls_, cli, mr, ka)
        a_up = a_lo if dedup else _aug_current(cus_, cui, mr, ka)

        node = self.previous
        while node.transformer is not None:
            if isinstance(node.transformer, str):          # 'flatten'
                node = node.previous
                continue
            pls, pli, pus, pui = node.transformer
            p_dedup = (pls is pus) and (pli is pui)
            assert jnp.asarray(pls).shape[0] == k_true
            n_prev = jnp.asarray(pls).shape[1]
            na = _pad_dim(n_prev)
            p_lo = _aug_prev(pls, pli, ka, na)
            p_up = p_lo if p_dedup else _aug_prev(pus, pui, ka, na)

            step_dedup = dedup and p_dedup
            a_lo, a_up = pallas_compose(a_lo, a_up, p_lo, p_up, step_dedup)
            dedup = step_dedup
            k_true, ka = n_prev, na
            node = node.previous

        # TODO(synk): fuse this per-layer compose loop into one kernel
        # (emit_pipeline over layers, running slope resident in VMEM).
        self._concretize(a_lo, a_up, dedup, m, node)


class DeepPolyLinearLayer:
    """JAX port of the PyTorch module: forward() wraps (W, b, W, b) into a
    DeepPolyConstraints transformer node (pure bookkeeping, no compute)."""

    def __init__(self, W, b):
        self.W = jnp.asarray(W, _F32)                   # [out, in]
        self.b = jnp.asarray(b, _F32).reshape(1, -1)    # [1, out]

    def __call__(self, previous):
        return DeepPolyConstraints.constraints_from_transformer(
            previous, self.W, self.b, self.W, self.b)

    forward = __call__


# ----------------------------------------------------------------------------
# Pure-JAX reference (mirrors the PyTorch math exactly)
# ----------------------------------------------------------------------------
def _ref_backsub(transformers, lb0, ub0):
    """transformers: list from last layer to first: [(ls, li, us, ui), ...]."""
    cls_, cli, cus_, cui = transformers[0]
    for pls, pli, pus, pui in transformers[1:]:
        cls_pos = jnp.maximum(cls_, 0.0)
        cls_neg = jnp.minimum(cls_, 0.0)
        cus_pos = jnp.maximum(cus_, 0.0)
        cus_neg = jnp.minimum(cus_, 0.0)
        cli = pli @ cls_pos.T + pui @ cls_neg.T + cli
        cui = pui @ cus_pos.T + pli @ cus_neg.T + cui
        cls_ = cls_pos @ pls + cls_neg @ pus
        cus_ = cus_pos @ pus + cus_neg @ pls
    ls_pos = jnp.maximum(cls_, 0.0)
    ls_neg = jnp.minimum(cls_, 0.0)
    us_pos = jnp.maximum(cus_, 0.0)
    us_neg = jnp.minimum(cus_, 0.0)
    lb = lb0 @ ls_pos.T + ub0 @ ls_neg.T + cli
    ub = ub0 @ us_pos.T + lb0 @ us_neg.T + cui
    return lb, ub


# ----------------------------------------------------------------------------
if __name__ == "__main__":
    key = jax.random.PRNGKey(0)
    ks = jax.random.split(key, 8)

    batch, n_in, h1, h2, n_out = 2, 32, 20, 16, 8
    eps, clipper = 0.1, (0.0, 1.0)

    x = jax.random.uniform(ks[0], (batch, n_in), _F32)
    W1 = jax.random.normal(ks[1], (h1, n_in), _F32) * 0.2
    b1 = jax.random.normal(ks[2], (h1,), _F32) * 0.1
    W2 = jax.random.normal(ks[3], (h2, h1), _F32) * 0.2
    b2 = jax.random.normal(ks[4], (h2,), _F32) * 0.1
    W3 = jax.random.normal(ks[5], (n_out, h2), _F32) * 0.2
    b3 = jax.random.normal(ks[6], (n_out,), _F32) * 0.1
    b1r, b2r, b3r = b1.reshape(1, -1), b2.reshape(1, -1), b3.reshape(1, -1)

    lin1 = DeepPolyLinearLayer(W1, b1)
    lin2 = DeepPolyLinearLayer(W2, b2)
    lin3 = DeepPolyLinearLayer(W3, b3)

    # ----- pure-linear chain: exercises the dedup compose + certify kernels --
    c0 = DeepPolyConstraints.constraints_from_eps(x, eps, clipper)
    cf = DeepPolyConstraints.constraints_from_flatten(c0, c0.lbounds, c0.ubounds)
    c1 = lin1(cf)          # forward() of DeepPolyLinearLayer
    c2 = lin2(c1)
    c3 = lin3(c2)

    c3.backsubstitution()
    lb = jax.block_until_ready(c3.lbounds)
    ub = jax.block_until_ready(c3.ubounds)

    ref_chain = [(W3, b3r, W3, b3r), (W2, b2r, W2, b2r), (W1, b1r, W1, b1r)]
    rlb, rub = _ref_backsub(ref_chain, c0.lbounds, c0.ubounds)

    assert lb.shape == (batch, n_out) and ub.shape == (batch, n_out)
    np.testing.assert_allclose(np.asarray(lb), np.asarray(rlb), rtol=2e-5, atol=2e-5)
    np.testing.assert_allclose(np.asarray(ub), np.asarray(rub), rtol=2e-5, atol=2e-5)
    assert bool(jnp.all(ub >= lb))

    # ----- single layer (certifier only, no compose step) --------------------
    c1.backsubstitution()
    rlb1, rub1 = _ref_backsub([(W1, b1r, W1, b1r)], c0.lbounds, c0.ubounds)
    np.testing.assert_allclose(np.asarray(c1.lbounds), np.asarray(rlb1),
                               rtol=2e-5, atol=2e-5)
    np.testing.assert_allclose(np.asarray(c1.ubounds), np.asarray(rub1),
                               rtol=2e-5, atol=2e-5)

    # ----- general path: distinct lower/upper transformers -------------------
    ls1, us1 = W1, W1 * 0.95 + 0.01
    li1, ui1 = b1r, b1r + 0.03
    ls2, us2 = W2, W2 * 1.05 - 0.02
    li2, ui2 = b2r - 0.01, b2r + 0.02
    g1 = DeepPolyConstraints.constraints_from_transformer(c0, ls1, li1, us1, ui1)
    g2 = DeepPolyConstraints.constraints_from_transformer(g1, ls2, li2, us2, ui2)
    g2.backsubstitution()
    glb = jax.block_until_ready(g2.lbounds)
    gub = jax.block_until_ready(g2.ubounds)
    grlb, grub = _ref_backsub([(ls2, li2, us2, ui2), (ls1, li1, us1, ui1)],
                              c0.lbounds, c0.ubounds)
    assert glb.shape == (batch, h2) and gub.shape == (batch, h2)
    np.testing.assert_allclose(np.asarray(glb), np.asarray(grlb), rtol=2e-5, atol=2e-5)
    np.testing.assert_allclose(np.asarray(gub), np.asarray(grub), rtol=2e-5, atol=2e-5)

    print("KERNEL_OK")
</pallas_src>

<mosaic_0001>
module attributes {stable_mosaic.version = 11 : i64} {
  func.func @_compose_dedup_kernel(%arg0: i32, %arg1: i32, %arg2: i32, %arg3: memref<1x8x128xf32, #tpu.memory_space<vmem>>, %arg4: memref<128x128xf32, #tpu.memory_space<vmem>>, %arg5: memref<8x128xf32, #tpu.memory_space<vmem>>, %arg6: memref<8x128xf32, #tpu.memory_space<vmem>>) attributes {dimension_semantics = [#tpu.dimension_semantics<parallel>, #tpu.dimension_semantics<parallel>, #tpu.dimension_semantics<arbitrary>], iteration_bounds = array<i64: 1, 1, 1>, scalar_prefetch = 0 : i64, scratch_operands = 1 : i64, tpu.core_type = #tpu.core_type<tc>, window_params = [{transform_indices = @transform_0, window_bounds = array<i64: 1, 8, 128>}, {transform_indices = @transform_1, window_bounds = array<i64: 128, 128>}, {transform_indices = @transform_2, window_bounds = array<i64: 8, 128>}]} {
    %c0_i32 = arith.constant 0 : i32
    %0 = arith.cmpi eq, %arg2, %c0_i32 : i32
    %1 = arith.extui %0 : i1 to i32
    %c0_i32_0 = arith.constant 0 : i32
    %2 = arith.cmpi ne, %1, %c0_i32_0 : i32
    scf.if %2 {
      %cst_10 = arith.constant 0.000000e+00 : f32
      %14 = vector.broadcast %cst_10 : f32 to vector<8x128xf32>
      %c0_11 = arith.constant 0 : index
      %c0_12 = arith.constant 0 : index
      %15 = vector.load %arg6[%c0_11, %c0_12] : memref<8x128xf32, #tpu.memory_space<vmem>>, vector<8x128xf32>
      tpu.vector_store %arg6[%c0_11, %c0_12], %14 {strides = array<i32>} : memref<8x128xf32, #tpu.memory_space<vmem>>, vector<8x128xf32>,
    } else {
    }
    %3 = arith.index_cast %arg2 : i32 to index
    %c0 = arith.constant 0 : index
    %c0_1 = arith.constant 0 : index
    %4 = vector.load %arg3[%3, %c0, %c0_1] : memref<1x8x128xf32, #tpu.memory_space<vmem>>, vector<1x8x128xf32>
    %5 = vector.shape_cast %4 : vector<1x8x128xf32> to vector<8x128xf32>
    %c0_2 = arith.constant 0 : index
    %c0_3 = arith.constant 0 : index
    %6 = vector.load %arg6[%c0_2, %c0_3] : memref<8x128xf32, #tpu.memory_space<vmem>>, vector<8x128xf32>
    %c0_4 = arith.constant 0 : index
    %c0_5 = arith.constant 0 : index
    %7 = vector.load %arg4[%c0_4, %c0_5] : memref<128x128xf32, #tpu.memory_space<vmem>>, vector<128x128xf32>
    %cst = arith.constant dense<0.000000e+00> : vector<8x128xf32>
    %8 = tpu.matmul %5, %7, %cst {dimension_numbers = #tpu.dot_dimension_numbers<[1], [0], [0], [1], [0, 0, 1, 1], [], []>} : vector<8x128xf32>, vector<128x128xf32>, vector<8x128xf32> -> vector<8x128xf32>
    %9 = arith.addf %6, %8 : vector<8x128xf32>
    %c0_6 = arith.constant 0 : index
    %c0_7 = arith.constant 0 : index
    %10 = vector.load %arg6[%c0_6, %c0_7] : memref<8x128xf32, #tpu.memory_space<vmem>>, vector<8x128xf32>
    tpu.vector_store %arg6[%c0_6, %c0_7], %9 {strides = array<i32>} : memref<8x128xf32, #tpu.memory_space<vmem>>, vector<8x128xf32>,
    %c0_i32_8 = arith.constant 0 : i32
    %11 = arith.cmpi eq, %arg2, %c0_i32_8 : i32
    %12 = arith.extui %11 : i1 to i32
    %c0_i32_9 = arith.constant 0 : i32
    %13 = arith.cmpi ne, %12, %c0_i32_9 : i32
    scf.if %13 {
      %c0_10 = arith.constant 0 : index
      %c0_11 = arith.constant 0 : index
      %14 = vector.load %arg6[%c0_10, %c0_11] : memref<8x128xf32, #tpu.memory_space<vmem>>, vector<8x128xf32>
      %c0_12 = arith.constant 0 : index
      %c0_13 = arith.constant 0 : index
      %15 = vector.load %arg5[%c0_12, %c0_13] : memref<8x128xf32, #tpu.memory_space<vmem>>, vector<8x128xf32>
      tpu.vector_store %arg5[%c0_12, %c0_13], %14 {strides = array<i32>} : memref<8x128xf32, #tpu.memory_space<vmem>>, vector<8x128xf32>,
    } else {
    }
    return
  }
  func.func @transform_0(%arg0: i32, %arg1: i32, %arg2: i32) -> (i32, i32, i32) {
    %c0_i32 = arith.constant 0 : i32
    %c0_i32_0 = arith.constant 0 : i32
    %c0_i32_1 = arith.constant 0 : i32
    return %c0_i32, %arg0, %c0_i32_0 : i32, i32, i32
  }
  func.func @transform_1(%arg0: i32, %arg1: i32, %arg2: i32) -> (i32, i32) {
    %c0_i32 = arith.constant 0 : i32
    return %arg2, %arg1 : i32, i32
  }
  func.func @transform_2(%arg0: i32, %arg1: i32, %arg2: i32) -> (i32, i32) {
    %c0_i32 = arith.constant 0 : i32
    return %arg0, %arg1 : i32, i32
  }
}

</mosaic_0001>

<bundles_post_ra>
// kernel: tpu_custom_call.1
= control target key start
LH: loop header
LB: loop body
LE: loop exit
PB: predicated region body
PF: predicated region fallthrough
CT: control target
= control target key end

     0   :  { %7 = vsyncpa [#allocation4], 0  ;;  %s378_s0 = inlined_call_operand.hbm [shape: f32[1,8,128], index: 0, kind: input, shape index: {}]   ;;  %s379_s1 = inlined_call_operand.hbm [shape: f32[128,128], index: 1, kind: input, shape index: {}]   ;;  %s380_s2 = inlined_call_operand.hbm [shape: f32[8,128], index: 2, kind: output, shape index: {}]  }
   0x1   :  { %8 = vsyncpa [#allocation7], 0 }
   0x2   :  { %9 = vsyncpa [#allocation5], 0  ;;  %s312_s9 = smov [#allocation3]   ;;  %s313_s11 = smov [#allocation6]  }
   0x3   :  { %s16_s10 = sshll.u32 %s312_s9, 4  ;;  %s25_s12 = sshll.u32 %s313_s11, 4  ;;  %s17_s10 = int_to_ptr.vmem [resolvable:$true] %s16_s10  ;;  %s335_s12 = int_to_ptr.vmem [resolvable:$true] %s25_s12 }
   0x4   :  { %s240_s15 = scalar_lea.hbm %s378_s0, 128 }
   0x5   :  { %p241_p0 = scmp.ne.s32.totalorder %s378_s0, %s240_s15  ;;  %p244_p1 = scmp.lt.u32.totalorder %s240_s15, %s378_s0 }
   0x7   :  { %p246_p2 = pnand %p244_p1, %p241_p0 }
   0x9   :  { %249 = shalt.err (!%p246_p2)
}
   0xa   :  { %s250_s20 = scalar_lea.vmem %s17_s10, 128  ;;  %p255_p4 = scmp.lt.s32.totalorder %s17_s10, %s17_s10 }
   0xb   :  { %p251_p3 = scmp.ne.s32.totalorder %s17_s10, %s250_s20  ;;  %p256_p5 = scmp.lt.s32.totalorder %s250_s20, %s250_s20 }
   0xd   :  { %p257_p6 = por %p256_p5, %p255_p4 }
   0xf   :  { %p258_p7 = pnand %p257_p6, %p251_p3 }
  0x11   :  { %261 = shalt.err (!%p258_p7)
}
  0x12   :  { %19 = dma.hbm_to_vmem [thread:$0]  %s378_s0, 128, %s17_s10, [#allocation4]  }
  0x13   :  { %s262_s25 = scalar_lea.hbm %s379_s1, 2048 }
  0x14   :  { %p263_p8 = scmp.ne.s32.totalorder %s379_s1, %s262_s25  ;;  %p266_p9 = scmp.lt.u32.totalorder %s262_s25, %s379_s1 }
  0x16   :  { %p268_p10 = pnand %p266_p9, %p263_p8 }
  0x18   :  { %271 = shalt.err (!%p268_p10)
}
  0x19   :  { %s272_s30 = scalar_lea.vmem %s335_s12, 2048  ;;  %p277_p12 = scmp.lt.s32.totalorder %s335_s12, %s335_s12 }
  0x1a   :  { %p273_p11 = scmp.ne.s32.totalorder %s335_s12, %s272_s30  ;;  %p278_p13 = scmp.lt.s32.totalorder %s272_s30, %s272_s30 }
  0x1c   :  { %p279_p0 = por %p278_p13, %p277_p12 }
  0x1e   :  { %p280_p1 = pnand %p279_p0, %p273_p11 }
  0x20   :  { %283 = shalt.err (!%p280_p1)
}
  0x21   :  { %s314_s0 = smov 128   ;;  %s315_s3 = smov 8  }
  0x22   :  { %31 = dma.hbm_to_vmem [thread:$0]  %s379_s1, 2048, %s335_s12, [#allocation7], %s314_s0, %s314_s0, %s315_s3  }
  0x23   :  { %306 = dma.done.wait [#allocation4], 128  }
  0x24   :  { %307 = vsyncadd [#allocation4], 4294967168 }
  0x25   :  { %308 = dma.done.wait [#allocation7], 2048  }
  0x26   :  { %309 = vsyncadd [#allocation7], 4294965248  ;;  %v316_v0 = vmov 0.0|0.0   ;;  %vm317_vm0 = vmmov 0   ;;  %v318_v1 = vmov 0.0   ;;  %v47_v2 = vld [vmem:[#allocation6] sm:$0xff] }
  0x27   :  { %208 = vmatprep.subr.bf16.mxu0 %v316_v0  ;;  %205 = vmatprep.mubr.msk.f32.mxu0 %vm317_vm0, %v318_v1  ;;  %v48_v3 = vld [vmem:[#allocation6 + $0x8] sm:$0xff]  ;;  %v49_v4 = vld [vmem:[#allocation6 + $0x10] sm:$0xff]  ;;  %v50_v6 = vld [vmem:[#allocation6 + $0x18] sm:$0xff]  ;;  %s319_s1 = smov [#allocation8]  }
  0x28   :  { %v209_v5 = vpack.c.bf16 %v48_v3, %v47_v2  ;;  %v212_v7 = vpack.c.bf16 %v50_v6, %v49_v4  ;;  %v51_v8 = vld [vmem:[#allocation6 + $0x20] sm:$0xff]  ;;  %v52_v9 = vld [vmem:[#allocation6 + $0x28] sm:$0xff]  ;;  %v53_v11 = vld [vmem:[#allocation6 + $0x30] sm:$0xff]  ;;  %s146_s6 = sshll.u32 %s319_s1, 4  ;;  %s147_s6 = int_to_ptr.vmem [resolvable:$true] %s146_s6 }
  0x29   :  { %v215_v10 = vpack.c.bf16 %v52_v9, %v51_v8  ;;  %v54_v12 = vld [vmem:[#allocation6 + $0x38] sm:$0xff]  ;;  %v55_v14 = vld [vmem:[#allocation6 + $0x40] sm:$0xff]  ;;  %v56_v15 = vld [vmem:[#allocation6 + $0x48] sm:$0xff]  ;;  %s284_s7 = scalar_lea.vmem %s147_s6, 128  ;;  %p289_p3 = scmp.lt.s32.totalorder %s147_s6, %s147_s6 }
  0x2a   :  { %210 = vmatpush3.bf16.msra.mxu0 %v209_v5  ;;  %v218_v13 = vpack.c.bf16 %v54_v12, %v53_v11  ;;  %v221_v16 = vpack.c.bf16 %v56_v15, %v55_v14  ;;  %v57_v17 = vld [vmem:[#allocation6 + $0x50] sm:$0xff]  ;;  %v58_v18 = vld [vmem:[#allocation6 + $0x58] sm:$0xff]  ;;  %v59_v20 = vld [vmem:[#allocation6 + $0x60] sm:$0xff]  ;;  %p285_p2 = scmp.ne.s32.totalorder %s147_s6, %s284_s7  ;;  %p290_p4 = scmp.lt.s32.totalorder %s284_s7, %s284_s7 }
  0x2b   :  { %211 = vmatprep.subr.bf16.mxu0 %v316_v0  ;;  %v224_v19 = vpack.c.bf16 %v58_v18, %v57_v17  ;;  %v60_v21 = vld [vmem:[#allocation6 + $0x68] sm:$0xff]  ;;  %v61_v23 = vld [vmem:[#allocation6 + $0x70] sm:$0xff]  ;;  %v62_v24 = vld [vmem:[#allocation6 + $0x78] sm:$0xff] }
  0x2c   :  { %v227_v22 = vpack.c.bf16 %v60_v21, %v59_v20  ;;  %v230_v25 = vpack.c.bf16 %v62_v24, %v61_v23  ;;  %v45_v26 = vld [vmem:[#allocation3] sm:$0xff]  ;;  %p291_p5 = por %p290_p4, %p289_p3 }
  0x2e   :  { %213 = vmatpush3.bf16.msra.mxu0 %v212_v7  ;;  %p292_p6 = pnand %p291_p5, %p285_p2 }
  0x2f   :  { %214 = vmatprep.subr.bf16.mxu0 %v316_v0 }
  0x32   :  { %216 = vmatpush3.bf16.msra.mxu0 %v215_v10 }
  0x33   :  { %217 = vmatprep.subr.bf16.mxu0 %v316_v0 }
  0x36   :  { %219 = vmatpush3.bf16.msra.mxu0 %v218_v13 }
  0x37   :  { %220 = vmatprep.subr.bf16.mxu0 %v316_v0 }
  0x3a   :  { %222 = vmatpush3.bf16.msra.mxu0 %v221_v16 }
  0x3b   :  { %223 = vmatprep.subr.bf16.mxu0 %v316_v0 }
  0x3e   :  { %225 = vmatpush3.bf16.msra.mxu0 %v224_v19 }
  0x3f   :  { %226 = vmatprep.subr.bf16.mxu0 %v316_v0 }
  0x42   :  { %228 = vmatpush3.bf16.msra.mxu0 %v227_v22 }
  0x43   :  { %229 = vmatprep.subr.bf16.mxu0 %v316_v0 }
  0x46   :  { %231 = vmatpush3.bf16.msra.mxu0 %v230_v25 }
  0x49   :  { %206 = vmatmul.mubr.f32.vlgmr.msra.gmra.mrb[0].mxu0 %v45_v26 }
 0x11c   :  { %v129_v27 = vpop.f32.mrb[0].mxu0 }
 0x11d   :  { %139 = vst [vmem:[#allocation8] sm:$0xff] %v129_v27  ;;  %v207_v28 = vpop.f32.mrb[1].mxu0 }
 0x11e   :  { %295 = shalt.err (!%p292_p6)
}
 0x11f   :  { %s296_s10 = scalar_lea.hbm %s380_s2, 128 }
 0x120   :  { %p297_p7 = scmp.ne.s32.totalorder %s380_s2, %s296_s10  ;;  %p300_p8 = scmp.lt.u32.totalorder %s296_s10, %s380_s2 }
 0x122   :  { %p302_p9 = pnand %p300_p8, %p297_p7 }
 0x124   :  { %305 = shalt.err (!%p302_p9)
}
 0x125   :  { %149 = dma.vmem_to_hbm [thread:$0]  %s147_s6, 128, %s380_s2, [#allocation5]  }
 0x126   :  { %310 = dma.done.wait [#allocation5], 128  }
 0x127   :  { %311 = vsyncadd [#allocation5], 4294967168 }
 0x128   :  { %153 = vsyncpa [#allocation4], 1 }
 0x129   :  { %154 = vsyncpa [#allocation7], 1 }
 0x12a   :  { %155 = vsyncpa [#allocation5], 1 }

</bundles_post_ra>
